<compile_context>
chip_gen: v6e
topology: v6e:2x2x1
jax: 0.10.0
libtpu: 0.0.40
codegen_flags: <defaults>
</compile_context>

<pallas_src>
import jax
import jax.numpy as jnp
from jax import lax
from jax.experimental import pallas as pl
from jax.experimental.pallas import tpu as pltpu


def _round_up(x, m):
    return ((x + m - 1) // m) * m


def relation_encoder_kernel(x_ref, w0_ref, b0_ref, w1_ref, b1_ref,
                            w2_ref, b2_ref, o_ref):
    # x_ref : (tile_m, Z) f32   — natural row-major rows of the flattened input.
    # w*_ref: (out, in) f32 (PyTorch nn.Linear layout); b*_ref: (1, out) f32.
    # o_ref : (tile_m, output_dim)
    dn = (((1,), (1,)), ((), ()))  # contract last axes of both operands: x @ W.T

    # layer 0: relu(x @ W0.T + b0)   (transpose folded into the MXU, f32 acc)
    h = lax.dot_general(x_ref[...], w0_ref[...], dn,
                        preferred_element_type=jnp.float32)
    h = jnp.maximum(h + b0_ref[...], 0.0)
    # layer 1
    h = lax.dot_general(h, w1_ref[...], dn,
                        preferred_element_type=jnp.float32)
    h = jnp.maximum(h + b1_ref[...], 0.0)
    # layer 2
    h = lax.dot_general(h, w2_ref[...], dn,
                        preferred_element_type=jnp.float32)
    h = jnp.maximum(h + b2_ref[...], 0.0)

    o_ref[...] = h.astype(o_ref.dtype)  # natural (tile_m, output_dim) store


def relation_encoder_forward(x, params, *, tile_m=4096, out_dtype=jnp.float32):
    """x: (B, N, Z) float32 -> (B, N, output_dim).

    params are in PyTorch nn.Linear layout: w_i (out, in), b_i (out,).
    """
    w0, b0, w1, b1, w2, b2 = params
    B, N, Z = x.shape
    M = B * N
    hidden_dim = w0.shape[0]
    output_dim = w2.shape[0]
    assert w0.shape[1] == Z

    # Row tile: multiple of 128 (lane granule).  Pad M up to a tile multiple.
    # When there are at least 2*128 rows, cap the tile at m_pad/2 so the
    # "parallel" grid axis has >=2 steps (shards across v7x's 2 TensorCores).
    m_pad = _round_up(M, 128)
    tile = max(128, _round_up(tile_m, 128))
    if m_pad >= 256:
        tile = min(tile, max(128, (m_pad // 2) // 128 * 128))
    else:
        tile = min(tile, m_pad)
    m_pad = _round_up(m_pad, tile)

    x2 = x.reshape(M, Z).astype(jnp.float32)
    if m_pad != M:
        x2 = jnp.pad(x2, ((0, m_pad - M), (0, 0)))  # pad rows give garbage, sliced off

    # Biases shaped (1, out) for sublane broadcast; everything stays f32.
    w0c = w0.astype(jnp.float32)
    w1c = w1.astype(jnp.float32)
    w2c = w2.astype(jnp.float32)
    b0c = b0.reshape(1, hidden_dim).astype(jnp.float32)
    b1c = b1.reshape(1, hidden_dim).astype(jnp.float32)
    b2c = b2.reshape(1, output_dim).astype(jnp.float32)

    grid = (m_pad // tile,)

    out2 = pl.pallas_call(
        relation_encoder_kernel,
        out_shape=jax.ShapeDtypeStruct((m_pad, output_dim), out_dtype),
        grid_spec=pltpu.PrefetchScalarGridSpec(
            num_scalar_prefetch=0,
            grid=grid,
            in_specs=[
                pl.BlockSpec((tile, Z), lambda i: (i, 0)),                  # x rows
                pl.BlockSpec((hidden_dim, Z), lambda i: (0, 0)),            # W0
                pl.BlockSpec((1, hidden_dim), lambda i: (0, 0)),            # b0
                pl.BlockSpec((hidden_dim, hidden_dim), lambda i: (0, 0)),   # W1
                pl.BlockSpec((1, hidden_dim), lambda i: (0, 0)),            # b1
                pl.BlockSpec((output_dim, hidden_dim), lambda i: (0, 0)),   # W2
                pl.BlockSpec((1, output_dim), lambda i: (0, 0)),            # b2
            ],
            out_specs=pl.BlockSpec((tile, output_dim), lambda i: (i, 0)),
        ),
        compiler_params=pltpu.CompilerParams(
            dimension_semantics=("parallel",),   # row tiles shard across TCs (v7x)
            vmem_limit_bytes=32 * 1024 * 1024,   # ~14 MiB used at tile=4096
        ),
    )(x2, w0c, b0c, w1c, b1c, w2c, b2c)

    return out2[:M].reshape(B, N, output_dim)


def init_params(key, input_dim, hidden_dim, output_dim):
    """Deterministic synthetic parameters in PyTorch nn.Linear layout."""
    ks = jax.random.split(key, 6)

    def lin(kw, kb, fan_in, fan_out):
        bound = 1.0 / (fan_in ** 0.5)
        w = jax.random.uniform(kw, (fan_out, fan_in), jnp.float32, -bound, bound)
        b = jax.random.uniform(kb, (fan_out,), jnp.float32, -bound, bound)
        return w, b

    w0, b0 = lin(ks[0], ks[1], input_dim, hidden_dim)
    w1, b1 = lin(ks[2], ks[3], hidden_dim, hidden_dim)
    w2, b2 = lin(ks[4], ks[5], hidden_dim, output_dim)
    return (w0, b0, w1, b1, w2, b2)


def reference_forward(x, params):
    w0, b0, w1, b1, w2, b2 = params
    B, N, Z = x.shape
    h = x.reshape(B * N, Z)
    h = jnp.maximum(h @ w0.T + b0, 0.0)
    h = jnp.maximum(h @ w1.T + b1, 0.0)
    h = jnp.maximum(h @ w2.T + b2, 0.0)
    return h.reshape(B, N, w2.shape[0])


if __name__ == "__main__":
    key = jax.random.PRNGKey(0)
    k_x, k_p = jax.random.split(key)

    B, N = 2, 8                 # -> M = 16 rows (wrapper pads to one 128-row tile)
    input_dim, hidden_dim, output_dim = 16, 32, 24

    x = jax.random.normal(k_x, (B, N, input_dim), jnp.float32)
    params = init_params(k_p, input_dim, hidden_dim, output_dim)

    out = relation_encoder_forward(x, params)
    out = jax.block_until_ready(out)

    ref = reference_forward(x, params)
    assert out.shape == (B, N, output_dim)
    # f32 operands; MXU default precision can round through bf16 passes, so
    # allow a modest tolerance.
    assert jnp.allclose(out, ref, atol=3e-2, rtol=3e-2), "mismatch vs reference"

    print("KERNEL_OK")
</pallas_src>

<mosaic_0001>
module attributes {stable_mosaic.version = 11 : i64} {
  func.func @relation_encoder_kernel(%arg0: i32, %arg1: memref<128x16xf32, #tpu.memory_space<vmem>>, %arg2: memref<32x16xf32, #tpu.memory_space<vmem>>, %arg3: memref<1x32xf32, #tpu.memory_space<vmem>>, %arg4: memref<32x32xf32, #tpu.memory_space<vmem>>, %arg5: memref<1x32xf32, #tpu.memory_space<vmem>>, %arg6: memref<24x32xf32, #tpu.memory_space<vmem>>, %arg7: memref<1x24xf32, #tpu.memory_space<vmem>>, %arg8: memref<128x24xf32, #tpu.memory_space<vmem>>) attributes {dimension_semantics = [#tpu.dimension_semantics<parallel>], iteration_bounds = array<i64: 1>, scalar_prefetch = 0 : i64, scratch_operands = 0 : i64, tpu.core_type = #tpu.core_type<tc>, window_params = [{transform_indices = @transform_0, window_bounds = array<i64: 128, 16>}, {pipeline_mode = #tpu.pipeline_mode<synchronous>, transform_indices = @transform_1, window_bounds = array<i64: 32, 16>}, {pipeline_mode = #tpu.pipeline_mode<synchronous>, transform_indices = @transform_2, window_bounds = array<i64: 1, 32>}, {pipeline_mode = #tpu.pipeline_mode<synchronous>, transform_indices = @transform_3, window_bounds = array<i64: 32, 32>}, {pipeline_mode = #tpu.pipeline_mode<synchronous>, transform_indices = @transform_4, window_bounds = array<i64: 1, 32>}, {pipeline_mode = #tpu.pipeline_mode<synchronous>, transform_indices = @transform_5, window_bounds = array<i64: 24, 32>}, {pipeline_mode = #tpu.pipeline_mode<synchronous>, transform_indices = @transform_6, window_bounds = array<i64: 1, 24>}, {transform_indices = @transform_7, window_bounds = array<i64: 128, 24>}]} {
    %c0 = arith.constant 0 : index
    %c0_0 = arith.constant 0 : index
    %0 = vector.load %arg1[%c0, %c0_0] : memref<128x16xf32, #tpu.memory_space<vmem>>, vector<128x16xf32>
    %c0_1 = arith.constant 0 : index
    %c0_2 = arith.constant 0 : index
    %1 = vector.load %arg2[%c0_1, %c0_2] : memref<32x16xf32, #tpu.memory_space<vmem>>, vector<32x16xf32>
    %cst = arith.constant dense<0.000000e+00> : vector<128x32xf32>
    %2 = tpu.matmul %0, %1, %cst {dimension_numbers = #tpu.dot_dimension_numbers<[1], [1], [0], [0], [0, 0, 1, 0], [], []>} : vector<128x16xf32>, vector<32x16xf32>, vector<128x32xf32> -> vector<128x32xf32>
    %c0_3 = arith.constant 0 : index
    %c0_4 = arith.constant 0 : index
    %3 = vector.load %arg3[%c0_3, %c0_4] : memref<1x32xf32, #tpu.memory_space<vmem>>, vector<1x32xf32>
    %4 = vector.broadcast %3 : vector<1x32xf32> to vector<128x32xf32>
    %5 = arith.addf %2, %4 : vector<128x32xf32>
    %cst_5 = arith.constant 0.000000e+00 : f32
    %6 = vector.broadcast %cst_5 : f32 to vector<128x32xf32>
    %7 = arith.maximumf %5, %6 : vector<128x32xf32>
    %c0_6 = arith.constant 0 : index
    %c0_7 = arith.constant 0 : index
    %8 = vector.load %arg4[%c0_6, %c0_7] : memref<32x32xf32, #tpu.memory_space<vmem>>, vector<32x32xf32>
    %cst_8 = arith.constant dense<0.000000e+00> : vector<128x32xf32>
    %9 = tpu.matmul %7, %8, %cst_8 {dimension_numbers = #tpu.dot_dimension_numbers<[1], [1], [0], [0], [0, 0, 1, 0], [], []>} : vector<128x32xf32>, vector<32x32xf32>, vector<128x32xf32> -> vector<128x32xf32>
    %c0_9 = arith.constant 0 : index
    %c0_10 = arith.constant 0 : index
    %10 = vector.load %arg5[%c0_9, %c0_10] : memref<1x32xf32, #tpu.memory_space<vmem>>, vector<1x32xf32>
    %11 = vector.broadcast %10 : vector<1x32xf32> to vector<128x32xf32>
    %12 = arith.addf %9, %11 : vector<128x32xf32>
    %cst_11 = arith.constant 0.000000e+00 : f32
    %13 = vector.broadcast %cst_11 : f32 to vector<128x32xf32>
    %14 = arith.maximumf %12, %13 : vector<128x32xf32>
    %c0_12 = arith.constant 0 : index
    %c0_13 = arith.constant 0 : index
    %15 = vector.load %arg6[%c0_12, %c0_13] : memref<24x32xf32, #tpu.memory_space<vmem>>, vector<24x32xf32>
    %cst_14 = arith.constant dense<0.000000e+00> : vector<128x24xf32>
    %16 = tpu.matmul %14, %15, %cst_14 {dimension_numbers = #tpu.dot_dimension_numbers<[1], [1], [0], [0], [0, 0, 1, 0], [], []>} : vector<128x32xf32>, vector<24x32xf32>, vector<128x24xf32> -> vector<128x24xf32>
    %c0_15 = arith.constant 0 : index
    %c0_16 = arith.constant 0 : index
    %17 = vector.load %arg7[%c0_15, %c0_16] : memref<1x24xf32, #tpu.memory_space<vmem>>, vector<1x24xf32>
    %18 = vector.broadcast %17 : vector<1x24xf32> to vector<128x24xf32>
    %19 = arith.addf %16, %18 : vector<128x24xf32>
    %cst_17 = arith.constant 0.000000e+00 : f32
    %20 = vector.broadcast %cst_17 : f32 to vector<128x24xf32>
    %21 = arith.maximumf %19, %20 : vector<128x24xf32>
    %c0_18 = arith.constant 0 : index
    %c0_19 = arith.constant 0 : index
    %22 = vector.load %arg8[%c0_18, %c0_19] : memref<128x24xf32, #tpu.memory_space<vmem>>, vector<128x24xf32>
    tpu.vector_store %arg8[%c0_18, %c0_19], %21 {strides = array<i32>} : memref<128x24xf32, #tpu.memory_space<vmem>>, vector<128x24xf32>,
    return
  }
  func.func @transform_0(%arg0: i32) -> (i32, i32) {
    %c0_i32 = arith.constant 0 : i32
    %c0_i32_0 = arith.constant 0 : i32
    return %arg0, %c0_i32 : i32, i32
  }
  func.func @transform_1(%arg0: i32) -> (i32, i32) {
    %c0_i32 = arith.constant 0 : i32
    %c0_i32_0 = arith.constant 0 : i32
    %c0_i32_1 = arith.constant 0 : i32
    return %c0_i32, %c0_i32_0 : i32, i32
  }
  func.func @transform_2(%arg0: i32) -> (i32, i32) {
    %c0_i32 = arith.constant 0 : i32
    %c0_i32_0 = arith.constant 0 : i32
    %c0_i32_1 = arith.constant 0 : i32
    return %c0_i32, %c0_i32_0 : i32, i32
  }
  func.func @transform_3(%arg0: i32) -> (i32, i32) {
    %c0_i32 = arith.constant 0 : i32
    %c0_i32_0 = arith.constant 0 : i32
    %c0_i32_1 = arith.constant 0 : i32
    return %c0_i32, %c0_i32_0 : i32, i32
  }
  func.func @transform_4(%arg0: i32) -> (i32, i32) {
    %c0_i32 = arith.constant 0 : i32
    %c0_i32_0 = arith.constant 0 : i32
    %c0_i32_1 = arith.constant 0 : i32
    return %c0_i32, %c0_i32_0 : i32, i32
  }
  func.func @transform_5(%arg0: i32) -> (i32, i32) {
    %c0_i32 = arith.constant 0 : i32
    %c0_i32_0 = arith.constant 0 : i32
    %c0_i32_1 = arith.constant 0 : i32
    return %c0_i32, %c0_i32_0 : i32, i32
  }
  func.func @transform_6(%arg0: i32) -> (i32, i32) {
    %c0_i32 = arith.constant 0 : i32
    %c0_i32_0 = arith.constant 0 : i32
    %c0_i32_1 = arith.constant 0 : i32
    return %c0_i32, %c0_i32_0 : i32, i32
  }
  func.func @transform_7(%arg0: i32) -> (i32, i32) {
    %c0_i32 = arith.constant 0 : i32
    %c0_i32_0 = arith.constant 0 : i32
    return %arg0, %c0_i32 : i32, i32
  }
}

</mosaic_0001>

<bundles_post_ra>
// kernel: tpu_custom_call.1
= control target key start
LH: loop header
LB: loop body
LE: loop exit
PB: predicated region body
PF: predicated region fallthrough
CT: control target
= control target key end

     0   :  { %vm53_vm0 = vcmask 130048   ;;  %vm286_vm1 = vcmask 261120   ;;  %vm736_vm2 = vcmask 195584   ;;  %s1270_s1 = inlined_call_operand.vmem [shape: f32[32,16], index: 1, kind: input, shape index: {}]   ;;  %s1271_s0 = inlined_call_operand.vmem [shape: f32[128,16], index: 0, kind: input, shape index: {}]   ;;  %s1272_s3 = inlined_call_operand.vmem [shape: f32[32,32], index: 3, kind: input, shape index: {}]   ;;  %s1273_s5 = inlined_call_operand.vmem [shape: f32[24,32], index: 5, kind: input, shape index: {}]   ;;  %s1274_s2 = inlined_call_operand.vmem [shape: f32[1,32], index: 2, kind: input, shape index: {}]   ;;  %s1275_s4 = inlined_call_operand.vmem [shape: f32[1,32], index: 4, kind: input, shape index: {}]   ;;  %s1276_s6 = inlined_call_operand.vmem [shape: f32[1,24], index: 6, kind: input, shape index: {}]   ;;  %s1277_s7 = inlined_call_operand.vmem [shape: f32[128,24], index: 7, kind: output, shape index: {}]  }
   0x1   :  { %v45_v0 = vld [vmem:[%s1270_s1 + $0x18] sm:$0xff]  ;;  %v44_v1 = vld [vmem:[%s1270_s1 + $0x10] sm:$0xff]  ;;  %v26_v2 = vld [vmem:[%s1271_s0] sm:$0xff] }
   0x2   :  { %878 = vmatprep.subr.msk.mxu0 %vm53_vm0, %v45_v0  ;;  %972 = vmatprep.subr.msk.mxu1 %vm53_vm0, %v45_v0  ;;  %v43_v3 = vld [vmem:[%s1270_s1 + $0x8] sm:$0xff]  ;;  %v34_v4 = vld [vmem:[%s1271_s0 + $0x40] sm:$0xff]  ;;  %v278_v6 = vld [vmem:[%s1272_s3 + $0x18] sm:$0xff] }
   0x3   :  { %879 = vmatpush3.xpose.msk.msra.mxu0 %vm53_vm0, %v45_v0  ;;  %976 = vmatpush3.xpose.msk.msra.mxu1 %vm53_vm0, %v45_v0  ;;  %v42_v5 = vld [vmem:[%s1270_s1] sm:$0xff]  ;;  %v27_v7 = vld [vmem:[%s1271_s0 + $0x8] sm:$0xff]  ;;  %v28_v9 = vld [vmem:[%s1271_s0 + $0x10] sm:$0xff] }
   0x4   :  { %880 = vmatprep.subr.msk.mxu0 %vm53_vm0, %v44_v1  ;;  %886 = vmatprep.mubr.msk.f32.mxu0 %vm53_vm0, %v26_v2  ;;  %v35_v8 = vld [vmem:[%s1271_s0 + $0x48] sm:$0xff]  ;;  %v36_v10 = vld [vmem:[%s1271_s0 + $0x50] sm:$0xff]  ;;  %v29_v12 = vld [vmem:[%s1271_s0 + $0x18] sm:$0xff] }
   0x5   :  { %973 = vmatprep.subr.msk.mxu1 %vm53_vm0, %v44_v1  ;;  %898 = vmatprep.mubr.msk.f32.mxu1 %vm53_vm0, %v34_v4  ;;  %v277_v11 = vld [vmem:[%s1272_s3 + $0x10] sm:$0xff]  ;;  %v37_v13 = vld [vmem:[%s1271_s0 + $0x58] sm:$0xff]  ;;  %v30_v14 = vld [vmem:[%s1271_s0 + $0x20] sm:$0xff] }
   0x6   :  { %v38_v15 = vld [vmem:[%s1271_s0 + $0x60] sm:$0xff]  ;;  %v276_v16 = vld [vmem:[%s1272_s3 + $0x8] sm:$0xff]  ;;  %v32_v19 = vld [vmem:[%s1271_s0 + $0x30] sm:$0xff] }
   0x7   :  { %881 = vmatpush3.xpose.msk.msra.mxu0 %vm53_vm0, %v44_v1  ;;  %977 = vmatpush3.xpose.msk.msra.mxu1 %vm53_vm0, %v44_v1  ;;  %v31_v17 = vld [vmem:[%s1271_s0 + $0x28] sm:$0xff]  ;;  %v40_v20 = vld [vmem:[%s1271_s0 + $0x70] sm:$0xff]  ;;  %v33_v21 = vld [vmem:[%s1271_s0 + $0x38] sm:$0xff] }
   0x8   :  { %882 = vmatprep.subr.msk.mxu0 %vm53_vm0, %v43_v3  ;;  %974 = vmatprep.subr.msk.mxu1 %vm53_vm0, %v43_v3  ;;  %v39_v18 = vld [vmem:[%s1271_s0 + $0x68] sm:$0xff]  ;;  %v41_v22 = vld [vmem:[%s1271_s0 + $0x78] sm:$0xff]  ;;  %v275_v23 = vld [vmem:[%s1272_s3] sm:$0xff] }
   0x9   :  { %v510_v24 = vld [vmem:[%s1273_s5 + $0x10] sm:$0xff]  ;;  %v509_v25 = vld [vmem:[%s1273_s5 + $0x8] sm:$0xff]  ;;  %v757_v26 = vld [vmem:[%s1274_s2] ss:$0 sm:$0xff] }
   0xb   :  { %883 = vmatpush3.xpose.msk.msra.mxu0 %vm53_vm0, %v43_v3  ;;  %978 = vmatpush3.xpose.msk.msra.mxu1 %vm53_vm0, %v43_v3 }
   0xc   :  { %884 = vmatprep.subr.msk.mxu0 %vm53_vm0, %v42_v5  ;;  %975 = vmatprep.subr.msk.mxu1 %vm53_vm0, %v42_v5 }
   0xf   :  { %885 = vmatpush3.xpose.msk.msra.mxu0 %vm53_vm0, %v42_v5  ;;  %979 = vmatpush3.xpose.msk.msra.mxu1 %vm53_vm0, %v42_v5 }
  0x10   :  { %910 = vmatprep.subr.msk.mxu1 %vm286_vm1, %v278_v6  ;;  %942 = vmatprep.subr.msk.mxu0 %vm286_vm1, %v510_v24 }
  0x12   :  { %887 = vmatmul.mubr.msk.f32.vlgmr.msra.gmra.mxu0 %vm53_vm0, %v27_v7  ;;  %899 = vmatmul.mubr.msk.f32.vlgmr.msra.gmra.mxu1 %vm53_vm0, %v35_v8 }
  0x13   :  { %889 = vmatprep.mubr.msk.f32.mxu0 %vm53_vm0, %v28_v9  ;;  %901 = vmatprep.mubr.msk.f32.mxu1 %vm53_vm0, %v36_v10 }
  0x14   :  { %911 = vmatpush3.xpose.msk.msra.mxu1 %vm286_vm1, %v278_v6  ;;  %943 = vmatpush3.xpose.msk.msra.mxu0 %vm286_vm1, %v510_v24 }
  0x15   :  { %912 = vmatprep.subr.msk.mxu1 %vm286_vm1, %v277_v11  ;;  %944 = vmatprep.subr.msk.mxu0 %vm286_vm1, %v509_v25 }
  0x16   :  { %890 = vmatmul.mubr.msk.f32.gmra.mxu0 %vm53_vm0, %v29_v12  ;;  %902 = vmatmul.mubr.msk.f32.gmra.mxu1 %vm53_vm0, %v37_v13  ;;  %v778_v12 = vld [vmem:[%s1275_s4] ss:$0 sm:$0xff] }
  0x17   :  { %892 = vmatprep.mubr.msk.f32.mxu0 %vm53_vm0, %v30_v14  ;;  %904 = vmatprep.mubr.msk.f32.mxu1 %vm53_vm0, %v38_v15 }
  0x18   :  { %913 = vmatpush3.xpose.msk.msra.mxu1 %vm286_vm1, %v277_v11  ;;  %945 = vmatpush3.xpose.msk.msra.mxu0 %vm286_vm1, %v509_v25  ;;  %v508_v11 = vld [vmem:[%s1273_s5] sm:$0xff] }
  0x19   :  { %914 = vmatprep.subr.msk.mxu1 %vm286_vm1, %v276_v16  ;;  %946 = vmatprep.subr.msk.mxu0 %vm286_vm1, %v508_v11 }
  0x1a   :  { %893 = vmatmul.mubr.msk.f32.gmra.mxu0 %vm53_vm0, %v31_v17  ;;  %905 = vmatmul.mubr.msk.f32.gmra.mxu1 %vm53_vm0, %v39_v18 }
  0x1b   :  { %895 = vmatprep.mubr.msk.f32.mxu0 %vm53_vm0, %v32_v19  ;;  %907 = vmatprep.mubr.msk.f32.mxu1 %vm53_vm0, %v40_v20 }
  0x1c   :  { %915 = vmatpush3.xpose.msk.msra.mxu1 %vm286_vm1, %v276_v16  ;;  %947 = vmatpush3.xpose.msk.msra.mxu0 %vm286_vm1, %v508_v11 }
  0x1d   :  { %916 = vmatprep.subr.msk.mxu1 %vm286_vm1, %v275_v23 }
  0x1e   :  { %896 = vmatmul.mubr.msk.f32.gmra.mxu0 %vm53_vm0, %v33_v21  ;;  %908 = vmatmul.mubr.msk.f32.gmra.mxu1 %vm53_vm0, %v41_v22 }
  0x20   :  { %917 = vmatpush3.xpose.msk.msra.mxu1 %vm286_vm1, %v275_v23 }
  0xd2   :  { %v888_v27 = vpop.f32.mrf.mxu0  ;;  %v900_v28 = vpop.f32.mrf.mxu1 }
  0xd3   :  { %v186_v29 = vadd.f32 %v888_v27, %v757_v26  ;;  %v226_v60 = vadd.f32 %v900_v28, %v757_v26 }
  0xd4   :  { %v180_v30 = vpop.f32.mrf.mxu0  ;;  %v220_v31 = vpop.f32.mrf.mxu1 }
  0xd5   :  { %v181_v32 = vadd.f32 %v757_v26, %v180_v30  ;;  %v260_v36 = vmax.f32 %v186_v29, 0.0  ;;  %v221_v50 = vadd.f32 %v757_v26, %v220_v31  ;;  %v268_v0 = vmax.f32 %v226_v60, 0.0 }
  0xd6   :  { %v891_v33 = vpop.f32.mrf.mxu0  ;;  %v903_v34 = vpop.f32.mrf.mxu1 }
  0xd7   :  { %v259_v35 = vmax.f32 %v181_v32, 0.0  ;;  %v196_v37 = vadd.f32 %v891_v33, %v757_v26  ;;  %v267_v57 = vmax.f32 %v221_v50, 0.0  ;;  %v236_v1 = vadd.f32 %v903_v34, %v757_v26 }
  0xd8   :  { %v190_v38 = vpop.f32.mrf.mxu0  ;;  %v230_v39 = vpop.f32.mrf.mxu1 }
  0xd9   :  { %v191_v40 = vadd.f32 %v757_v26, %v190_v38  ;;  %918 = vmatprep.mubr.msk.f32.mxu1 %vm286_vm1, %v259_v35  ;;  %v262_v43 = vmax.f32 %v196_v37, 0.0  ;;  %v231_v58 = vadd.f32 %v757_v26, %v230_v39  ;;  %v270_v5 = vmax.f32 %v236_v1, 0.0 }
  0xda   :  { %v894_v41 = vpop.f32.mrf.mxu0  ;;  %919 = vmatmul.mubr.msk.f32.vlgmr.msra.gmra.mxu1 %vm286_vm1, %v260_v36  ;;  %v906_v46 = vpop.f32.mrf.mxu1 }
  0xdb   :  { %v261_v42 = vmax.f32 %v191_v40, 0.0  ;;  %v206_v44 = vadd.f32 %v894_v41, %v757_v26  ;;  %v269_v62 = vmax.f32 %v231_v58, 0.0  ;;  %v246_v6 = vadd.f32 %v906_v46, %v757_v26 }
  0xdc   :  { %v200_v45 = vpop.f32.mrf.mxu0  ;;  %v240_v54 = vpop.f32.mrf.mxu1 }
  0xdd   :  { %v201_v47 = vadd.f32 %v757_v26, %v200_v45  ;;  %921 = vmatprep.mubr.msk.f32.mxu1 %vm286_vm1, %v261_v42  ;;  %v264_v51 = vmax.f32 %v206_v44, 0.0  ;;  %v241_v63 = vadd.f32 %v757_v26, %v240_v54  ;;  %v272_v8 = vmax.f32 %v246_v6, 0.0 }
  0xde   :  { %v897_v48 = vpop.f32.mrf.mxu0  ;;  %922 = vmatmul.mubr.msk.f32.gmra.mxu1 %vm286_vm1, %v262_v43  ;;  %v909_v61 = vpop.f32.mrf.mxu1 }
  0xdf   :  { %v263_v49 = vmax.f32 %v201_v47, 0.0  ;;  %v216_v52 = vadd.f32 %v897_v48, %v757_v26  ;;  %v271_v3 = vmax.f32 %v241_v63, 0.0  ;;  %v256_v9 = vadd.f32 %v909_v61, %v757_v26  ;;  %v1188_v61 = vld [vmem:[%s1276_s6] ss:$0 sm:$0xff] }
  0xe0   :  { %v210_v53 = vpop.f32.mrf.mxu0  ;;  %v250_v2 = vpop.f32.mrf.mxu1 }
  0xe1   :  { %v211_v55 = vadd.f32 %v757_v26, %v210_v53  ;;  %924 = vmatprep.mubr.msk.f32.mxu1 %vm286_vm1, %v263_v49  ;;  %v266_v59 = vmax.f32 %v216_v52, 0.0  ;;  %v251_v4 = vadd.f32 %v757_v26, %v250_v2  ;;  %v274_v10 = vmax.f32 %v256_v9, 0.0 }
  0xe2   :  { %925 = vmatmul.mubr.msk.f32.gmra.mxu1 %vm286_vm1, %v264_v51 }
  0xe3   :  { %v265_v56 = vmax.f32 %v211_v55, 0.0  ;;  %v273_v7 = vmax.f32 %v251_v4, 0.0 }
  0xe5   :  { %927 = vmatprep.mubr.msk.f32.mxu1 %vm286_vm1, %v265_v56 }
  0xe6   :  { %928 = vmatmul.mubr.msk.f32.gmra.mxu1 %vm286_vm1, %v266_v59 }
  0xe7   :  { %930 = vmatprep.mubr.msk.f32.mxu1 %vm286_vm1, %v267_v57 }
  0xea   :  { %931 = vmatmul.mubr.msk.f32.gmra.mxu1 %vm286_vm1, %v268_v0 }
  0xeb   :  { %933 = vmatprep.mubr.msk.f32.mxu1 %vm286_vm1, %v269_v62 }
  0xee   :  { %934 = vmatmul.mubr.msk.f32.gmra.mxu1 %vm286_vm1, %v270_v5 }
  0xef   :  { %936 = vmatprep.mubr.msk.f32.mxu1 %vm286_vm1, %v271_v3 }
  0xf2   :  { %937 = vmatmul.mubr.msk.f32.gmra.mxu1 %vm286_vm1, %v272_v8 }
  0xf3   :  { %939 = vmatprep.mubr.msk.f32.mxu1 %vm286_vm1, %v273_v7 }
  0xf6   :  { %940 = vmatmul.mubr.msk.f32.gmra.mxu1 %vm286_vm1, %v274_v10 }
 0x19a   :  { %v920_v13 = vpop.f32.mrf.mxu1 }
 0x19b   :  { %v419_v14 = vadd.f32 %v920_v13, %v778_v12 }
 0x19c   :  { %v413_v15 = vpop.f32.mrf.mxu1 }
 0x19d   :  { %v414_v16 = vadd.f32 %v778_v12, %v413_v15  ;;  %v493_v19 = vmax.f32 %v419_v14, 0.0 }
 0x19e   :  { %v923_v17 = vpop.f32.mrf.mxu1 }
 0x19f   :  { %v492_v18 = vmax.f32 %v414_v16, 0.0  ;;  %v429_v20 = vadd.f32 %v923_v17, %v778_v12 }
 0x1a0   :  { %v423_v21 = vpop.f32.mrf.mxu1 }
 0x1a1   :  { %v424_v22 = vadd.f32 %v778_v12, %v423_v21  ;;  %948 = vmatprep.mubr.msk.f32.mxu0 %vm286_vm1, %v492_v18  ;;  %v495_v25 = vmax.f32 %v429_v20, 0.0 }
 0x1a2   :  { %v926_v23 = vpop.f32.mrf.mxu1  ;;  %949 = vmatmul.mubr.msk.f32.vlgmr.msra.gmra.mxu0 %vm286_vm1, %v493_v19 }
 0x1a3   :  { %v494_v24 = vmax.f32 %v424_v22, 0.0  ;;  %v439_v26 = vadd.f32 %v926_v23, %v778_v12 }
 0x1a4   :  { %v433_v27 = vpop.f32.mrf.mxu1 }
 0x1a5   :  { %v434_v28 = vadd.f32 %v778_v12, %v433_v27  ;;  %951 = vmatprep.mubr.msk.f32.mxu0 %vm286_vm1, %v494_v24  ;;  %v497_v31 = vmax.f32 %v439_v26, 0.0 }
 0x1a6   :  { %v929_v29 = vpop.f32.mrf.mxu1  ;;  %952 = vmatmul.mubr.msk.f32.gmra.mxu0 %vm286_vm1, %v495_v25 }
 0x1a7   :  { %v496_v30 = vmax.f32 %v434_v28, 0.0  ;;  %v449_v32 = vadd.f32 %v929_v29, %v778_v12 }
 0x1a8   :  { %v443_v33 = vpop.f32.mrf.mxu1 }
 0x1a9   :  { %v444_v34 = vadd.f32 %v778_v12, %v443_v33  ;;  %954 = vmatprep.mubr.msk.f32.mxu0 %vm286_vm1, %v496_v30  ;;  %v499_v37 = vmax.f32 %v449_v32, 0.0 }
 0x1aa   :  { %v932_v35 = vpop.f32.mrf.mxu1  ;;  %955 = vmatmul.mubr.msk.f32.gmra.mxu0 %vm286_vm1, %v497_v31 }
 0x1ab   :  { %v498_v36 = vmax.f32 %v444_v34, 0.0  ;;  %v459_v38 = vadd.f32 %v932_v35, %v778_v12 }
 0x1ac   :  { %v453_v39 = vpop.f32.mrf.mxu1 }
 0x1ad   :  { %v454_v40 = vadd.f32 %v778_v12, %v453_v39  ;;  %957 = vmatprep.mubr.msk.f32.mxu0 %vm286_vm1, %v498_v36  ;;  %v501_v43 = vmax.f32 %v459_v38, 0.0 }
 0x1ae   :  { %v935_v41 = vpop.f32.mrf.mxu1  ;;  %958 = vmatmul.mubr.msk.f32.gmra.mxu0 %vm286_vm1, %v499_v37 }
 0x1af   :  { %v500_v42 = vmax.f32 %v454_v40, 0.0  ;;  %v469_v44 = vadd.f32 %v935_v41, %v778_v12 }
 0x1b0   :  { %v463_v45 = vpop.f32.mrf.mxu1 }
 0x1b1   :  { %v464_v46 = vadd.f32 %v778_v12, %v463_v45  ;;  %960 = vmatprep.mubr.msk.f32.mxu0 %vm286_vm1, %v500_v42  ;;  %v503_v49 = vmax.f32 %v469_v44, 0.0 }
 0x1b2   :  { %v938_v47 = vpop.f32.mrf.mxu1  ;;  %961 = vmatmul.mubr.msk.f32.gmra.mxu0 %vm286_vm1, %v501_v43 }
 0x1b3   :  { %v502_v48 = vmax.f32 %v464_v46, 0.0  ;;  %v479_v50 = vadd.f32 %v938_v47, %v778_v12 }
 0x1b4   :  { %v473_v51 = vpop.f32.mrf.mxu1 }
 0x1b5   :  { %v474_v52 = vadd.f32 %v778_v12, %v473_v51  ;;  %963 = vmatprep.mubr.msk.f32.mxu0 %vm286_vm1, %v502_v48  ;;  %v505_v55 = vmax.f32 %v479_v50, 0.0 }
 0x1b6   :  { %v941_v53 = vpop.f32.mrf.mxu1  ;;  %964 = vmatmul.mubr.msk.f32.gmra.mxu0 %vm286_vm1, %v503_v49 }
 0x1b7   :  { %v504_v54 = vmax.f32 %v474_v52, 0.0  ;;  %v489_v56 = vadd.f32 %v941_v53, %v778_v12 }
 0x1b8   :  { %v483_v57 = vpop.f32.mrf.mxu1 }
 0x1b9   :  { %v484_v58 = vadd.f32 %v778_v12, %v483_v57  ;;  %966 = vmatprep.mubr.msk.f32.mxu0 %vm286_vm1, %v504_v54  ;;  %v507_v60 = vmax.f32 %v489_v56, 0.0 }
 0x1ba   :  { %967 = vmatmul.mubr.msk.f32.gmra.mxu0 %vm286_vm1, %v505_v55 }
 0x1bb   :  { %v506_v59 = vmax.f32 %v484_v58, 0.0 }
 0x1bd   :  { %969 = vmatprep.mubr.msk.f32.mxu0 %vm286_vm1, %v506_v59 }
 0x1be   :  { %970 = vmatmul.mubr.msk.f32.gmra.mxu0 %vm286_vm1, %v507_v60 }
 0x262   :  { %v950_v62 = vpop.f32.mrf.mxu0 }
 0x263   :  { %v647_v63 = vadd.f32 %v950_v62, %v1188_v61 }
 0x264   :  { %v641_v0 = vpop.f32.mrf.mxu0 }
 0x265   :  { %v721_v1 = vmax.f32 %v647_v63, 0.0  ;;  %v642_v2 = vadd.f32 %v1188_v61, %v641_v0 }
 0x266   :  { %v953_v3 = vpop.f32.mrf.mxu0 }
 0x267   :  { %738 = vst.msk [vmem:[%s1277_s7 + $0x8] sm:$0xff] %vm736_vm2, %v721_v1  ;;  %v720_v4 = vmax.f32 %v642_v2, 0.0  ;;  %v657_v5 = vadd.f32 %v953_v3, %v1188_v61 }
 0x268   :  { %v651_v6 = vpop.f32.mrf.mxu0 }
 0x269   :  { %737 = vst.msk [vmem:[%s1277_s7] sm:$0xff] %vm736_vm2, %v720_v4  ;;  %v723_v7 = vmax.f32 %v657_v5, 0.0  ;;  %v652_v8 = vadd.f32 %v1188_v61, %v651_v6 }
 0x26a   :  { %v956_v9 = vpop.f32.mrf.mxu0 }
 0x26b   :  { %740 = vst.msk [vmem:[%s1277_s7 + $0x18] sm:$0xff] %vm736_vm2, %v723_v7  ;;  %v722_v10 = vmax.f32 %v652_v8, 0.0  ;;  %v667_v11 = vadd.f32 %v956_v9, %v1188_v61 }
 0x26c   :  { %v661_v12 = vpop.f32.mrf.mxu0 }
 0x26d   :  { %739 = vst.msk [vmem:[%s1277_s7 + $0x10] sm:$0xff] %vm736_vm2, %v722_v10  ;;  %v725_v13 = vmax.f32 %v667_v11, 0.0  ;;  %v662_v14 = vadd.f32 %v1188_v61, %v661_v12 }
 0x26e   :  { %v959_v15 = vpop.f32.mrf.mxu0 }
 0x26f   :  { %742 = vst.msk [vmem:[%s1277_s7 + $0x28] sm:$0xff] %vm736_vm2, %v725_v13  ;;  %v724_v16 = vmax.f32 %v662_v14, 0.0  ;;  %v677_v17 = vadd.f32 %v959_v15, %v1188_v61 }
 0x270   :  { %v671_v18 = vpop.f32.mrf.mxu0 }
 0x271   :  { %741 = vst.msk [vmem:[%s1277_s7 + $0x20] sm:$0xff] %vm736_vm2, %v724_v16  ;;  %v727_v19 = vmax.f32 %v677_v17, 0.0  ;;  %v672_v20 = vadd.f32 %v1188_v61, %v671_v18 }
 0x272   :  { %v962_v21 = vpop.f32.mrf.mxu0 }
 0x273   :  { %744 = vst.msk [vmem:[%s1277_s7 + $0x38] sm:$0xff] %vm736_vm2, %v727_v19  ;;  %v726_v22 = vmax.f32 %v672_v20, 0.0  ;;  %v687_v23 = vadd.f32 %v962_v21, %v1188_v61 }
 0x274   :  { %v681_v24 = vpop.f32.mrf.mxu0 }
 0x275   :  { %743 = vst.msk [vmem:[%s1277_s7 + $0x30] sm:$0xff] %vm736_vm2, %v726_v22  ;;  %v729_v25 = vmax.f32 %v687_v23, 0.0  ;;  %v682_v26 = vadd.f32 %v1188_v61, %v681_v24 }
 0x276   :  { %v965_v27 = vpop.f32.mrf.mxu0 }
 0x277   :  { %746 = vst.msk [vmem:[%s1277_s7 + $0x48] sm:$0xff] %vm736_vm2, %v729_v25  ;;  %v728_v28 = vmax.f32 %v682_v26, 0.0  ;;  %v697_v29 = vadd.f32 %v965_v27, %v1188_v61 }
 0x278   :  { %v691_v30 = vpop.f32.mrf.mxu0 }
 0x279   :  { %745 = vst.msk [vmem:[%s1277_s7 + $0x40] sm:$0xff] %vm736_vm2, %v728_v28  ;;  %v731_v31 = vmax.f32 %v697_v29, 0.0  ;;  %v692_v32 = vadd.f32 %v1188_v61, %v691_v30 }
 0x27a   :  { %v968_v33 = vpop.f32.mrf.mxu0 }
 0x27b   :  { %748 = vst.msk [vmem:[%s1277_s7 + $0x58] sm:$0xff] %vm736_vm2, %v731_v31  ;;  %v730_v34 = vmax.f32 %v692_v32, 0.0  ;;  %v707_v35 = vadd.f32 %v968_v33, %v1188_v61 }
 0x27c   :  { %v701_v36 = vpop.f32.mrf.mxu0 }
 0x27d   :  { %747 = vst.msk [vmem:[%s1277_s7 + $0x50] sm:$0xff] %vm736_vm2, %v730_v34  ;;  %v733_v37 = vmax.f32 %v707_v35, 0.0  ;;  %v702_v38 = vadd.f32 %v1188_v61, %v701_v36 }
 0x27e   :  { %v971_v39 = vpop.f32.mrf.mxu0 }
 0x27f   :  { %750 = vst.msk [vmem:[%s1277_s7 + $0x68] sm:$0xff] %vm736_vm2, %v733_v37  ;;  %v732_v40 = vmax.f32 %v702_v38, 0.0  ;;  %v717_v41 = vadd.f32 %v971_v39, %v1188_v61 }
 0x280   :  { %v711_v42 = vpop.f32.mrf.mxu0 }
 0x281   :  { %749 = vst.msk [vmem:[%s1277_s7 + $0x60] sm:$0xff] %vm736_vm2, %v732_v40  ;;  %v735_v43 = vmax.f32 %v717_v41, 0.0  ;;  %v712_v44 = vadd.f32 %v1188_v61, %v711_v42 }
 0x283   :  { %752 = vst.msk [vmem:[%s1277_s7 + $0x78] sm:$0xff] %vm736_vm2, %v735_v43  ;;  %v734_v45 = vmax.f32 %v712_v44, 0.0 }
 0x285   :  { %751 = vst.msk [vmem:[%s1277_s7 + $0x70] sm:$0xff] %vm736_vm2, %v734_v45 }

</bundles_post_ra>
